<compile_context>
chip_gen: v5e
topology: v5e:2x2
jax: 0.10.0
libtpu: 0.0.40
codegen_flags: <defaults>
</compile_context>

<pallas_src>
import jax
import jax.numpy as jnp
from jax.experimental import pallas as pl
from jax.experimental.pallas import tpu as pltpu

LN_EPS = 1e-5  # torch.nn.LayerNorm default


def _round_up(x, m):
    return (x + m - 1) // m * m


def state_encoder_kernel(x_ref, w_ref, p_ref, o_ref):
    # x_ref: (TB, F)  batch tile of features          (streamed / double-buffered)
    # w_ref: (F, S)   Linear weight, transposed        (resident across grid steps)
    # p_ref: (3, S)   rows = [bias; ln_gamma; ln_beta] (resident across grid steps)
    # o_ref: (TB, S)  output tile
    bias = p_ref[0:1, :]
    gamma = p_ref[1:2, :]
    beta = p_ref[2:3, :]

    # Linear: x @ W + b  (MXU matmul, f32 accumulate)
    h = jnp.dot(x_ref[...], w_ref[...], preferred_element_type=jnp.float32) + bias

    # LayerNorm over the last dim — two-pass stats (matches torch precision behavior),
    # biased variance like torch.nn.LayerNorm.
    mean = jnp.mean(h, axis=-1, keepdims=True)
    centered = h - mean
    var = jnp.mean(centered * centered, axis=-1, keepdims=True)
    inv = jax.lax.rsqrt(var + LN_EPS)
    normed = centered * inv * gamma + beta

    # Sigmoid (exp on the EUP path; no explicit multi-op f32 divide sequence)
    o_ref[...] = jax.nn.sigmoid(normed).astype(o_ref.dtype)


def _choose_batch_tile(B, tile_b=None):
    """Pick a sublane-aligned batch tile.

    Defaults: big tiles (cheap per-row traffic amortizes the ~0.35us per-step
    overhead) but capped at 8192 rows and sized to keep >= 4 grid steps on large
    batches (v7x megacore sharding + pipeline depth, v5e scoped-VMEM headroom).
    """
    if tile_b is None:
        tile_b = min(8192, max(8, _round_up(pl.cdiv(B, 4), 8)))
    tb = max(8, min(_round_up(tile_b, 8), _round_up(B, 8)))
    if tb >= B:
        # Whole batch fits in one tile: use the full extent (always a legal block
        # shape) and avoid a partial block entirely.
        tb = B
    return tb


def state_encoder(features, w, b, gamma, beta, *, tile_b=None):
    """features: (B, F); w: (F, S) (torch weight transposed); b, gamma, beta: (S,)."""
    B, F = features.shape
    S = w.shape[1]

    tb = _choose_batch_tile(B, tile_b)
    grid = pl.cdiv(B, tb)  # partial last block handled by Pallas (no pad / no slice)

    # Pack the three tiny per-feature vectors into one resident (3, S) block.
    params = jnp.stack([b, gamma, beta]).astype(jnp.float32)

    out = pl.pallas_call(
        state_encoder_kernel,
        out_shape=jax.ShapeDtypeStruct((B, S), jnp.float32),
        grid_spec=pltpu.PrefetchScalarGridSpec(
            num_scalar_prefetch=0,
            grid=(grid,),
            in_specs=[
                pl.BlockSpec((tb, F), lambda i: (i, 0)),   # streamed batch tile
                pl.BlockSpec((F, S), lambda i: (0, 0)),    # resident weight
                pl.BlockSpec((3, S), lambda i: (0, 0)),    # resident bias/gamma/beta
            ],
            out_specs=pl.BlockSpec((tb, S), lambda i: (i, 0)),
        ),
        compiler_params=pltpu.CompilerParams(
            # Batch tiles are independent -> shard grid steps across both v7x cores.
            dimension_semantics=("parallel",),
        ),
    )(features, w, params)
    return out


def reference(features, w, b, gamma, beta):
    h = features @ w + b
    mean = h.mean(-1, keepdims=True)
    var = ((h - mean) ** 2).mean(-1, keepdims=True)
    normed = (h - mean) / jnp.sqrt(var + LN_EPS) * gamma + beta
    return jax.nn.sigmoid(normed)


if __name__ == "__main__":
    key = jax.random.PRNGKey(0)
    batch, feature_dim, state_dim = 8, 64, 32

    k_x, k_w, k_b, k_g, k_be = jax.random.split(key, 5)
    features = jax.random.normal(k_x, (batch, feature_dim), dtype=jnp.float32)

    # Deterministic synthetic parameters (stand-in for utils.weight_init / orthogonal init)
    w = jax.random.normal(k_w, (feature_dim, state_dim), dtype=jnp.float32) * 0.1
    b = jax.random.normal(k_b, (state_dim,), dtype=jnp.float32) * 0.01
    gamma = jnp.ones((state_dim,), dtype=jnp.float32)
    beta = jnp.zeros((state_dim,), dtype=jnp.float32)

    # Single-tile path (whole batch in one full-extent block).
    out = state_encoder(features, w, b, gamma, beta)
    out = jax.block_until_ready(out)
    ref = reference(features, w, b, gamma, beta)
    assert out.shape == (batch, state_dim)
    assert jnp.allclose(out, ref, atol=1e-5, rtol=1e-5), "mismatch vs reference"

    # Partial-final-block path: B=10 with tb=8 -> grid of 2, last block has 2 live rows.
    feats_odd = jax.random.normal(k_x, (batch + 2, feature_dim), dtype=jnp.float32)
    out_odd = jax.block_until_ready(state_encoder(feats_odd, w, b, gamma, beta, tile_b=8))
    ref_odd = reference(feats_odd, w, b, gamma, beta)
    assert out_odd.shape == (batch + 2, state_dim)
    assert jnp.allclose(out_odd, ref_odd, atol=1e-5, rtol=1e-5), "mismatch (partial block)"

    # Multi-tile path with the default (auto) tile selection.
    feats_big = jax.random.normal(k_x, (4096 + 24, feature_dim), dtype=jnp.float32)
    out_big = jax.block_until_ready(state_encoder(feats_big, w, b, gamma, beta))
    ref_big = reference(feats_big, w, b, gamma, beta)
    assert out_big.shape == (4096 + 24, state_dim)
    assert jnp.allclose(out_big, ref_big, atol=1e-5, rtol=1e-5), "mismatch (multi-tile)"

    print("KERNEL_OK")
</pallas_src>

<mosaic_0001>
module attributes {stable_mosaic.version = 11 : i64} {
  func.func @state_encoder_kernel(%arg0: i32, %arg1: memref<8x64xf32, #tpu.memory_space<vmem>>, %arg2: memref<64x32xf32, #tpu.memory_space<vmem>>, %arg3: memref<3x32xf32, #tpu.memory_space<vmem>>, %arg4: memref<8x32xf32, #tpu.memory_space<vmem>>) attributes {dimension_semantics = [#tpu.dimension_semantics<parallel>], iteration_bounds = array<i64: 1>, scalar_prefetch = 0 : i64, scratch_operands = 0 : i64, tpu.core_type = #tpu.core_type<tc>, window_params = [{transform_indices = @transform_0, window_bounds = array<i64: 8, 64>}, {pipeline_mode = #tpu.pipeline_mode<synchronous>, transform_indices = @transform_1, window_bounds = array<i64: 64, 32>}, {pipeline_mode = #tpu.pipeline_mode<synchronous>, transform_indices = @transform_2, window_bounds = array<i64: 3, 32>}, {transform_indices = @transform_3, window_bounds = array<i64: 8, 32>}]} {
    %c0 = arith.constant 0 : index
    %c0_0 = arith.constant 0 : index
    %0 = vector.load %arg3[%c0, %c0_0] : memref<3x32xf32, #tpu.memory_space<vmem>>, vector<1x32xf32>
    %c1 = arith.constant 1 : index
    %c0_1 = arith.constant 0 : index
    %1 = vector.load %arg3[%c1, %c0_1] : memref<3x32xf32, #tpu.memory_space<vmem>>, vector<1x32xf32>
    %c2 = arith.constant 2 : index
    %c0_2 = arith.constant 0 : index
    %2 = vector.load %arg3[%c2, %c0_2] : memref<3x32xf32, #tpu.memory_space<vmem>>, vector<1x32xf32>
    %c0_3 = arith.constant 0 : index
    %c0_4 = arith.constant 0 : index
    %3 = vector.load %arg1[%c0_3, %c0_4] : memref<8x64xf32, #tpu.memory_space<vmem>>, vector<8x64xf32>
    %c0_5 = arith.constant 0 : index
    %c0_6 = arith.constant 0 : index
    %4 = vector.load %arg2[%c0_5, %c0_6] : memref<64x32xf32, #tpu.memory_space<vmem>>, vector<64x32xf32>
    %cst = arith.constant dense<0.000000e+00> : vector<8x32xf32>
    %5 = tpu.matmul %3, %4, %cst {dimension_numbers = #tpu.dot_dimension_numbers<[1], [0], [0], [1], [0, 0, 1, 1], [], []>} : vector<8x64xf32>, vector<64x32xf32>, vector<8x32xf32> -> vector<8x32xf32>
    %6 = vector.broadcast %0 : vector<1x32xf32> to vector<8x32xf32>
    %7 = arith.addf %5, %6 : vector<8x32xf32>
    %cst_7 = arith.constant dense<0.000000e+00> : vector<8xf32>
    %8 = vector.multi_reduction <add>, %7, %cst_7 [1] : vector<8x32xf32> to vector<8xf32>
    %9 = vector.shape_cast %8 : vector<8xf32> to vector<8x1xf32>
    %cst_8 = arith.constant 3.200000e+01 : f32
    %10 = vector.broadcast %cst_8 : f32 to vector<8x1xf32>
    %11 = arith.divf %9, %10 : vector<8x1xf32>
    %12 = vector.broadcast %11 : vector<8x1xf32> to vector<8x32xf32>
    %13 = arith.subf %7, %12 : vector<8x32xf32>
    %14 = arith.mulf %13, %13 : vector<8x32xf32>
    %cst_9 = arith.constant dense<0.000000e+00> : vector<8xf32>
    %15 = vector.multi_reduction <add>, %14, %cst_9 [1] : vector<8x32xf32> to vector<8xf32>
    %16 = vector.shape_cast %15 : vector<8xf32> to vector<8x1xf32>
    %cst_10 = arith.constant 3.200000e+01 : f32
    %17 = vector.broadcast %cst_10 : f32 to vector<8x1xf32>
    %18 = arith.divf %16, %17 : vector<8x1xf32>
    %cst_11 = arith.constant 9.99999974E-6 : f32
    %19 = vector.broadcast %cst_11 : f32 to vector<8x1xf32>
    %20 = arith.addf %18, %19 : vector<8x1xf32>
    %21 = math.rsqrt %20 : vector<8x1xf32>
    %22 = vector.broadcast %21 : vector<8x1xf32> to vector<8x32xf32>
    %23 = arith.mulf %13, %22 : vector<8x32xf32>
    %24 = vector.broadcast %1 : vector<1x32xf32> to vector<8x32xf32>
    %25 = arith.mulf %23, %24 : vector<8x32xf32>
    %26 = vector.broadcast %2 : vector<1x32xf32> to vector<8x32xf32>
    %27 = arith.addf %25, %26 : vector<8x32xf32>
    %28 = arith.negf %27 : vector<8x32xf32>
    %29 = math.exp %28 : vector<8x32xf32>
    %cst_12 = arith.constant 1.000000e+00 : f32
    %30 = vector.broadcast %cst_12 : f32 to vector<8x32xf32>
    %31 = arith.addf %30, %29 : vector<8x32xf32>
    %32 = arith.divf %30, %31 : vector<8x32xf32>
    %c0_13 = arith.constant 0 : index
    %c0_14 = arith.constant 0 : index
    %33 = vector.load %arg4[%c0_13, %c0_14] : memref<8x32xf32, #tpu.memory_space<vmem>>, vector<8x32xf32>
    tpu.vector_store %arg4[%c0_13, %c0_14], %32 {strides = array<i32>} : memref<8x32xf32, #tpu.memory_space<vmem>>, vector<8x32xf32>,
    return
  }
  func.func @transform_0(%arg0: i32) -> (i32, i32) {
    %c0_i32 = arith.constant 0 : i32
    %c0_i32_0 = arith.constant 0 : i32
    return %arg0, %c0_i32 : i32, i32
  }
  func.func @transform_1(%arg0: i32) -> (i32, i32) {
    %c0_i32 = arith.constant 0 : i32
    %c0_i32_0 = arith.constant 0 : i32
    %c0_i32_1 = arith.constant 0 : i32
    return %c0_i32, %c0_i32_0 : i32, i32
  }
  func.func @transform_2(%arg0: i32) -> (i32, i32) {
    %c0_i32 = arith.constant 0 : i32
    %c0_i32_0 = arith.constant 0 : i32
    %c0_i32_1 = arith.constant 0 : i32
    return %c0_i32, %c0_i32_0 : i32, i32
  }
  func.func @transform_3(%arg0: i32) -> (i32, i32) {
    %c0_i32 = arith.constant 0 : i32
    %c0_i32_0 = arith.constant 0 : i32
    return %arg0, %c0_i32 : i32, i32
  }
}

</mosaic_0001>

<bundles_post_ra>
// kernel: tpu_custom_call.1
= control target key start
LH: loop header
LB: loop body
LE: loop exit
PB: predicated region body
PF: predicated region fallthrough
CT: control target
= control target key end

     0   :  { %s227_s0 = inlined_call_operand.vmem [shape: f32[8,64], index: 0, kind: input, shape index: {}]   ;;  %s228_s1 = inlined_call_operand.vmem [shape: f32[64,32], index: 1, kind: input, shape index: {}]   ;;  %s229_s2 = inlined_call_operand.vmem [shape: f32[3,32], index: 2, kind: input, shape index: {}]   ;;  %s230_s3 = inlined_call_operand.hbm [shape: f32[8,32], index: 3, kind: output, shape index: {}]  }
   0x1   :  { %v26_v0 = vld [vmem:[%s228_s1 + $0x38] sm:$0xff]  ;;  %v25_v1 = vld [vmem:[%s228_s1 + $0x30] sm:$0xff]  ;;  %v24_v2 = vld [vmem:[%s228_s1 + $0x28] sm:$0xff] }
   0x2   :  { %40 = vmatpush.msra.mxu0 %v26_v0  ;;  %v23_v3 = vld [vmem:[%s228_s1 + $0x20] sm:$0xff] }
   0x4   :  { %41 = vmatpush.msra.mxu0 %v25_v1 }
   0x5   :  { %8 = vsyncpa [#allocation3], 0  ;;  %v22_v4 = vld [vmem:[%s228_s1 + $0x18] sm:$0xff]  ;;  %v21_v5 = vld [vmem:[%s228_s1 + $0x10] sm:$0xff]  ;;  %vm28_vm0 = vcmask 523264   ;;  %vm52_vm1 = vcmask 261120  }
   0x6   :  { %42 = vmatpush.msra.mxu0 %v24_v2  ;;  %v20_v6 = vld [vmem:[%s228_s1 + $0x8] sm:$0xff]  ;;  %v19_v7 = vld [vmem:[%s228_s1] sm:$0xff]  ;;  %v163_v13 = vmov 32.0   ;;  %s164_s7 = smov [#allocation2]  }
   0x7   :  { %v18_v8 = vld [vmem:[%s227_s0] sm:$0xff]  ;;  %129 = vrcp.f32 %v163_v13  ;;  %s111_s8 = sshll.u32 %s164_s7, 4  ;;  %s112_s8 = int_to_ptr.vmem [resolvable:$true] %s111_s8 }
   0x8   :  { %43 = vmatpush.msra.mxu0 %v23_v3  ;;  %v126_v9 = vld [vmem:[%s229_s2] ss:$0 sm:$0xff]  ;;  %v127_v34 = vld [vmem:[%s229_s2 + $0x1] ss:$0 sm:$0xff]  ;;  %v128_v36 = vld [vmem:[%s229_s2 + $0x2] ss:$0 sm:$0xff] }
   0x9   :  { %s113_s2 = sshll.u32 %s230_s3, 4  ;;  %s114_s2 = int_to_ptr.hbm [resolvable:$true] %s113_s2 }
   0xa   :  { %44 = vmatpush.msra.mxu0 %v22_v4 }
   0xc   :  { %45 = vmatpush.msra.mxu0 %v21_v5 }
   0xd   :  { %v130_v14 = vpop.eup %129 }
   0xe   :  { %46 = vmatpush.msra.mxu0 %v20_v6  ;;  %v57_v15 = vmul.f32 32.0, %v130_v14  ;;  %vm61_vm2 = vweird.f32 %v130_v14 }
  0x10   :  { %47 = vmatpush.msra.mxu0 %v19_v7  ;;  %v58_v16 = vsub.f32 1.0, %v57_v15 }
  0x11   :  { %122 = vmatmul.msk.f32.vlgmr.msra.gmra.mxu0 %vm28_vm0, %v18_v8 }
  0x12   :  { %v59_v17 = vmul.f32 %v130_v14, %v58_v16 }
  0x14   :  { %v60_v18 = vadd.f32 %v130_v14, %v59_v17 }
  0x16   :  { %v62_v19 = vsel %vm61_vm2, %v130_v14, %v60_v18 }
  0x8e   :  { %v49_v10 = vpop.f32.mrf.mxu0 }
  0x8f   :  { %v50_v11 = vadd.f32 %v126_v9, %v49_v10 }
  0x91   :  { %v53_v12 = vsel %vm52_vm1, %v50_v11, 0.0 }
  0x92   :  { %54 = vadd.xlane.f32.xlu0 %v53_v12 }
 0x105   :  { %v55_v20 = vpop.xlane.xlu0 %54 }
 0x106   :  { %v63_v21 = vmul.f32 %v62_v19, %v55_v20 }
 0x108   :  { %v64_v22 = vsub.f32 %v50_v11, %v63_v21 }
 0x10a   :  { %v65_v23 = vmul.f32 %v64_v22, %v64_v22 }
 0x10c   :  { %v66_v24 = vsel %vm52_vm1, %v65_v23, 0.0 }
 0x10d   :  { %67 = vadd.xlane.f32.xlu0 %v66_v24 }
 0x180   :  { %v68_v25 = vpop.xlane.xlu0 %67 }
 0x181   :  { %v69_v26 = vmul.f32 %v68_v25, %v62_v19 }
 0x183   :  { %v70_v27 = vadd.f32 1e-05, %v69_v26 }
 0x185   :  { %131 = vrsqrt.f32 %v70_v27  ;;  %vm77_vm4 = vweird.f32 %v70_v27 }
 0x18b   :  { %v132_v28 = vpop.eup %131 }
 0x18c   :  { %v72_v29 = vmul.f32 %v132_v28, %v70_v27  ;;  %vm78_vm3 = vweird.f32 %v132_v28 }
 0x18d   :  { %vm79_vm5 = vmor %vm77_vm4, %vm78_vm3 }
 0x18e   :  { %v73_v30 = vmul.f32 %v132_v28, %v72_v29 }
 0x190   :  { %v74_v31 = vmul.f32 0.5, %v73_v30 }
 0x192   :  { %v75_v32 = vsub.f32 1.5, %v74_v31 }
 0x194   :  { %v76_v33 = vmul.f32 %v132_v28, %v75_v32 }
 0x196   :  { %v80_v35 = vsel %vm79_vm5, %v132_v28, %v76_v33 }
 0x197   :  { %v81_v37 = vmul.f32 %v80_v35, %v64_v22 }
 0x199   :  { %v83_v38 = vmul.f32 %v127_v34, %v81_v37 }
 0x19b   :  { %v85_v39 = vadd.f32 %v128_v36, %v83_v38 }
 0x19d   :  { %v123_v40 = vmul.f32 -1.442695, %v85_v39 }
 0x19f   :  { %133 = vpow2.f32 %v123_v40 }
 0x1a5   :  { %v134_v41 = vpop.eup %133 }
 0x1a6   :  { %v89_v42 = vadd.f32 1.0, %v134_v41 }
 0x1a8   :  { %135 = vrcp.f32 %v89_v42  ;;  %v101_v46 = vand.u32 2147483648, %v89_v42  ;;  %v99_v48 = vand.u32 2147483647, %v89_v42  ;;  %vm95_vm7 = vweird.f32 %v89_v42 }
 0x1aa   :  { %v102_v50 = vor.u32 1.1754944e-38, %v101_v46  ;;  %vm100_vm9 = vcmp.eq.f32.partialorder %v99_v48, 8.507059e+37 }
 0x1ae   :  { %v136_v43 = vpop.eup %135 }
 0x1af   :  { %v91_v44 = vmul.f32 %v136_v43, %v89_v42  ;;  %vm96_vm6 = vweird.f32 %v136_v43 }
 0x1b0   :  { %vm97_vm8 = vmor %vm95_vm7, %vm96_vm6 }
 0x1b1   :  { %v92_v45 = vsub.f32 1.0, %v91_v44 }
 0x1b3   :  { %v93_v47 = vmul.f32 %v136_v43, %v92_v45 }
 0x1b5   :  { %v94_v49 = vadd.f32 %v136_v43, %v93_v47 }
 0x1b7   :  { %v98_v51 = vsel %vm97_vm8, %v136_v43, %v94_v49 }
 0x1b8   :  { %v103_v52 = vsel %vm100_vm9, %v102_v50, %v98_v51 }
 0x1b9   :  { %105 = vst.msk [vmem:[#allocation2] sm:$0xff] %vm52_vm1, %v103_v52 }
 0x1ba   :  { %116 = dma.vmem_to_hbm [thread:$0]  %s112_s8, 128, %s114_s2, [#allocation3]  }
 0x1bb   :  { %161 = dma.done.wait [#allocation3], 128  }
 0x1bc   :  { %162 = vsyncadd [#allocation3], 4294967168 }
 0x1bd   :  { %121 = vsyncpa [#allocation3], 1 }

</bundles_post_ra>
